<compile_context>
chip_gen: v7x
topology: tpu7x:2x2x1
jax: 0.10.0
libtpu: 0.0.40
codegen_flags: <defaults>
</compile_context>

<pallas_src>
import functools

import jax
import jax.numpy as jnp
from jax.experimental import pallas as pl
from jax.experimental.pallas import tpu as pltpu

_LANES = 128
_SUBLANES = 8


def _track_loss_kernel(y_pr_ref, y_gt_ref, vis_pr_ref, vis_gt_ref, w_ref, out_ref,
                       *, n_row_blocks, steps_per_core, valid_rows):
    """One grid cell: a (tm, *) tile of rows, each row holding 128 track points.

    y_*_ref:   (tm, D*128)  coords in native interleaved order (x0 y0 z0 x1 ...)
    vis_*_ref: (tm, 128)    logits / {0,1} targets
    w_ref:     (tm, 128)    per-point weights (zero on padded points)
    out_ref:   (1, 8, 128)  per-core partial-sum accumulator (resident across i)
    """
    c = pl.program_id(0)            # "parallel" axis -> a TensorCore on v7x
    i = pl.program_id(1)            # "arbitrary" axis -> reduction over row tiles

    @pl.when(i == 0)
    def _init():
        out_ref[...] = jnp.zeros_like(out_ref)

    step = c * steps_per_core + i   # global row-block id handled by this cell

    @pl.when(step < n_row_blocks)   # skip clamped duplicate blocks (core overhang)
    def _accumulate():
        tm, lanes = w_ref.shape
        dl = y_pr_ref.shape[1]
        d = dl // lanes             # coordinate dimension (3)

        # ---- position term on the interleaved layout (lane-dense VPU) --------
        diff = y_pr_ref[...].astype(jnp.float32) - y_gt_ref[...].astype(jnp.float32)
        sq = diff * diff                                          # (tm, D*128)

        # Per-point sum over the D interleaved lanes via an exact two-pass bf16
        # matmul with a 0/1 selector: sel[cc, p] = 1 iff lane cc belongs to point p.
        # hi is exactly representable in bf16, so dot(hi, sel) is exact; the lo
        # pass carries the remaining mantissa (error ~2^-18 relative, well inside
        # the 1e-5 tolerance) without relying on f32-matmul precision plumbing.
        cc = jax.lax.broadcasted_iota(jnp.int32, (dl, lanes), 0)
        pp = jax.lax.broadcasted_iota(jnp.int32, (dl, lanes), 1)
        sel = ((cc >= pp * d) & (cc < pp * d + d)).astype(jnp.bfloat16)
        hi = sq.astype(jnp.bfloat16)
        lo = (sq - hi.astype(jnp.float32)).astype(jnp.bfloat16)
        ssum = (jnp.dot(hi, sel, preferred_element_type=jnp.float32)
                + jnp.dot(lo, sel, preferred_element_type=jnp.float32))  # (tm, 128)
        l_pos = jnp.sqrt(jnp.maximum(ssum, 0.0))

        # ---- visibility term: numerically stable BCE-with-logits (EUP) -------
        x = vis_pr_ref[...].astype(jnp.float32)
        t = vis_gt_ref[...].astype(jnp.float32)
        l_vis = jnp.maximum(x, 0.0) - x * t + jnp.log1p(jnp.exp(-jnp.abs(x)))

        contrib = w_ref[...].astype(jnp.float32) * (l_pos + l_vis)       # (tm, 128)

        # Ragged last tile: rows past `valid_rows` contain garbage; select (not
        # multiply) so NaN/Inf garbage can never leak into the sum. Zero-padded
        # points inside valid rows carry w=0, so they contribute exactly 0.
        row_ids = step * tm + jax.lax.broadcasted_iota(jnp.int32, (tm, lanes), 0)
        contrib = jnp.where(row_ids < valid_rows, contrib, 0.0)

        # Vector accumulation: (tm,128) -> (8,128) with full-vreg VPU adds into
        # the per-core resident output block; no scalar/SMEM round-trip per step.
        out_ref[0] += contrib.reshape(tm // _SUBLANES, _SUBLANES, lanes).sum(axis=0)


def track_loss(y_pr, y_gt, vis_pr, vis_gt, w_p, w_g, *,
               max_block_rows=2048, num_cores=2):
    """Pallas TPU forward of dust3r TrackLoss. `w_g` is unused (as in PyTorch)."""
    del w_g                                    # module uses w = w_p
    B, N, D = y_pr.shape
    M = B * N

    # Pad the flat point count to a multiple of 8*128 so rows of 128 points tile
    # cleanly into (8,128) vregs; padded points get weight 0 and contribute 0.
    # When M is already a multiple of 1024 there is NO wrapper copy at all — the
    # reshapes below are free row-major views (no transpose).
    m_pad = -(-M // (_SUBLANES * _LANES)) * (_SUBLANES * _LANES)
    rows = m_pad // _LANES

    def as_rows(a, per_point):
        flat = a.reshape(-1)
        if m_pad != M:
            flat = jnp.pad(flat, (0, (m_pad - M) * per_point))
        return flat.reshape(rows, _LANES * per_point)

    y_pr_l = as_rows(y_pr, D)                  # (rows, D*128), native interleaving
    y_gt_l = as_rows(y_gt, D)
    vis_pr_l = as_rows(vis_pr, 1)              # (rows, 128)
    vis_gt_l = as_rows(vis_gt, 1)
    w_l = as_rows(w_p, 1)                      # zero-padded -> zero weight

    cap = max(_SUBLANES, (max_block_rows // _SUBLANES) * _SUBLANES)
    tm = min(cap, rows)                        # multiple of 8, <= rows
    n_row_blocks = -(-rows // tm)              # ragged last block masked in-kernel
    ncores = max(1, num_cores)                 # 2-way "parallel" axis (v7x megacore)
    steps_per_core = -(-n_row_blocks // ncores)

    def row_block(c, i):
        # Clamp so overhanging steps re-read the last valid block (their
        # contribution is skipped in-kernel), never an out-of-range block.
        return jnp.minimum(c * steps_per_core + i, n_row_blocks - 1)

    coord_spec = pl.BlockSpec((tm, D * _LANES), lambda c, i: (row_block(c, i), 0))
    point_spec = pl.BlockSpec((tm, _LANES), lambda c, i: (row_block(c, i), 0))

    kernel = functools.partial(
        _track_loss_kernel,
        n_row_blocks=n_row_blocks,
        steps_per_core=steps_per_core,
        valid_rows=rows,
    )

    partials = pl.pallas_call(
        kernel,
        out_shape=jax.ShapeDtypeStruct((ncores, _SUBLANES, _LANES), jnp.float32),
        grid_spec=pltpu.PrefetchScalarGridSpec(
            num_scalar_prefetch=0,
            grid=(ncores, steps_per_core),
            in_specs=[coord_spec, coord_spec, point_spec, point_spec, point_spec],
            out_specs=pl.BlockSpec((1, _SUBLANES, _LANES), lambda c, i: (c, 0, 0)),
        ),
        compiler_params=pltpu.CompilerParams(
            dimension_semantics=("parallel", "arbitrary"),
            vmem_limit_bytes=48 * 1024 * 1024,   # safe on v5e/v6e (128 MiB) and v7x (64 MiB)
        ),
    )(y_pr_l, y_gt_l, vis_pr_l, vis_gt_l, w_l)

    # Tiny final reduction of the per-core (8,128) partials; divide by the TRUE
    # point count so padding never biases the mean.
    return jnp.sum(partials) / M


def _track_loss_ref(y_pr, y_gt, vis_pr, vis_gt, w_p, w_g):
    """Plain-JAX reference matching the PyTorch TrackLoss.forward."""
    del w_g
    l_pos = jnp.linalg.norm(y_pr - y_gt, axis=-1)
    l_pos = jnp.mean(w_p * l_pos)
    x, t = vis_pr, vis_gt.astype(jnp.float32)
    l_vis = jnp.maximum(x, 0.0) - x * t + jnp.log1p(jnp.exp(-jnp.abs(x)))
    l_vis = jnp.mean(w_p * l_vis)
    return l_pos + l_vis


if __name__ == "__main__":
    # Small shapes consistent with the module: B track batches, N points, D=3 coords.
    B, N, D = 2, 64, 3

    key = jax.random.PRNGKey(0)
    k1, k2, k3, k4, k5 = jax.random.split(key, 5)

    y_pr = jax.random.normal(k1, (B, N, D), dtype=jnp.float32)
    y_gt = jax.random.normal(k2, (B, N, D), dtype=jnp.float32)
    vis_pr = jax.random.normal(k3, (B, N), dtype=jnp.float32)              # logits
    vis_gt = (jax.random.uniform(k4, (B, N)) > 0.5).astype(jnp.float32)    # {0,1}
    w_p = jax.random.uniform(k5, (B, N), dtype=jnp.float32)
    w_g = jnp.ones((B, N), dtype=jnp.float32)  # unused, mirrors forward signature

    loss = jax.block_until_ready(track_loss(y_pr, y_gt, vis_pr, vis_gt, w_p, w_g))
    loss_ref = _track_loss_ref(y_pr, y_gt, vis_pr, vis_gt, w_p, w_g)

    assert jnp.allclose(loss, loss_ref, rtol=1e-5, atol=1e-5), (loss, loss_ref)
    print("KERNEL_OK")
</pallas_src>

<mosaic_0001>
module attributes {stable_mosaic.version = 11 : i64} {
  func.func @_track_loss_kernel(%arg0: i32, %arg1: i32, %arg2: memref<8x384xf32, #tpu.memory_space<vmem>>, %arg3: memref<8x384xf32, #tpu.memory_space<vmem>>, %arg4: memref<8x128xf32, #tpu.memory_space<vmem>>, %arg5: memref<8x128xf32, #tpu.memory_space<vmem>>, %arg6: memref<8x128xf32, #tpu.memory_space<vmem>>, %arg7: memref<1x8x128xf32, #tpu.memory_space<vmem>>) attributes {dimension_semantics = [#tpu.dimension_semantics<parallel>, #tpu.dimension_semantics<arbitrary>], iteration_bounds = array<i64: 2, 1>, scalar_prefetch = 0 : i64, scratch_operands = 0 : i64, tpu.core_type = #tpu.core_type<tc>, window_params = [{transform_indices = @transform_0, window_bounds = array<i64: 8, 384>}, {transform_indices = @transform_1, window_bounds = array<i64: 8, 384>}, {transform_indices = @transform_2, window_bounds = array<i64: 8, 128>}, {transform_indices = @transform_3, window_bounds = array<i64: 8, 128>}, {transform_indices = @transform_4, window_bounds = array<i64: 8, 128>}, {transform_indices = @transform_5, window_bounds = array<i64: 1, 8, 128>}]} {
    %c0_i32 = arith.constant 0 : i32
    %0 = arith.cmpi eq, %arg1, %c0_i32 : i32
    %1 = arith.extui %0 : i1 to i32
    %c0_i32_0 = arith.constant 0 : i32
    %2 = arith.cmpi ne, %1, %c0_i32_0 : i32
    scf.if %2 {
      %cst = arith.constant 0.000000e+00 : f32
      %8 = vector.broadcast %cst : f32 to vector<1x8x128xf32>
      %c0 = arith.constant 0 : index
      %c0_3 = arith.constant 0 : index
      %c0_4 = arith.constant 0 : index
      %9 = vector.load %arg7[%c0, %c0_3, %c0_4] : memref<1x8x128xf32, #tpu.memory_space<vmem>>, vector<1x8x128xf32>
      tpu.vector_store %arg7[%c0, %c0_3, %c0_4], %8 {strides = array<i32>} : memref<1x8x128xf32, #tpu.memory_space<vmem>>, vector<1x8x128xf32>,
    } else {
    }
    %c1_i32 = arith.constant 1 : i32
    %3 = arith.muli %arg0, %c1_i32 : i32
    %4 = arith.addi %3, %arg1 : i32
    %c1_i32_1 = arith.constant 1 : i32
    %5 = arith.cmpi slt, %4, %c1_i32_1 : i32
    %6 = arith.extui %5 : i1 to i32
    %c0_i32_2 = arith.constant 0 : i32
    %7 = arith.cmpi ne, %6, %c0_i32_2 : i32
    scf.if %7 {
      %c0 = arith.constant 0 : index
      %c0_3 = arith.constant 0 : index
      %8 = vector.load %arg2[%c0, %c0_3] : memref<8x384xf32, #tpu.memory_space<vmem>>, vector<8x384xf32>
      %c0_4 = arith.constant 0 : index
      %c0_5 = arith.constant 0 : index
      %9 = vector.load %arg3[%c0_4, %c0_5] : memref<8x384xf32, #tpu.memory_space<vmem>>, vector<8x384xf32>
      %10 = arith.subf %8, %9 : vector<8x384xf32>
      %11 = arith.mulf %10, %10 : vector<8x384xf32>
      %12 = tpu.iota {dimensions = array<i32: 0>} : vector<384x128xi32>
      %13 = tpu.iota {dimensions = array<i32: 1>} : vector<384x128xi32>
      %c3_i32 = arith.constant 3 : i32
      %14 = vector.broadcast %c3_i32 : i32 to vector<384x128xi32>
      %15 = arith.muli %13, %14 : vector<384x128xi32>
      %16 = arith.cmpi sge, %12, %15 : vector<384x128xi32>
      %c3_i32_6 = arith.constant 3 : i32
      %17 = vector.broadcast %c3_i32_6 : i32 to vector<384x128xi32>
      %18 = arith.muli %13, %17 : vector<384x128xi32>
      %c3_i32_7 = arith.constant 3 : i32
      %19 = vector.broadcast %c3_i32_7 : i32 to vector<384x128xi32>
      %20 = arith.addi %18, %19 : vector<384x128xi32>
      %21 = arith.cmpi slt, %12, %20 : vector<384x128xi32>
      %22 = arith.andi %16, %21 : vector<384x128xi1>
      %23 = arith.extui %22 : vector<384x128xi1> to vector<384x128xi32>
      %24 = arith.sitofp %23 : vector<384x128xi32> to vector<384x128xf32>
      %25 = arith.truncf %24 : vector<384x128xf32> to vector<384x128xbf16>
      %26 = arith.truncf %11 : vector<8x384xf32> to vector<8x384xbf16>
      %27 = arith.extf %26 : vector<8x384xbf16> to vector<8x384xf32>
      %28 = arith.subf %11, %27 : vector<8x384xf32>
      %29 = arith.truncf %28 : vector<8x384xf32> to vector<8x384xbf16>
      %cst = arith.constant dense<0.000000e+00> : vector<8x128xf32>
      %30 = tpu.matmul %26, %25, %cst {dimension_numbers = #tpu.dot_dimension_numbers<[1], [0], [0], [1], [0, 0, 1, 1], [], []>} : vector<8x384xbf16>, vector<384x128xbf16>, vector<8x128xf32> -> vector<8x128xf32>
      %cst_8 = arith.constant dense<0.000000e+00> : vector<8x128xf32>
      %31 = tpu.matmul %29, %25, %cst_8 {dimension_numbers = #tpu.dot_dimension_numbers<[1], [0], [0], [1], [0, 0, 1, 1], [], []>} : vector<8x384xbf16>, vector<384x128xbf16>, vector<8x128xf32> -> vector<8x128xf32>
      %32 = arith.addf %30, %31 : vector<8x128xf32>
      %cst_9 = arith.constant 0.000000e+00 : f32
      %33 = vector.broadcast %cst_9 : f32 to vector<8x128xf32>
      %34 = arith.maximumf %32, %33 : vector<8x128xf32>
      %35 = math.sqrt %34 : vector<8x128xf32>
      %c0_10 = arith.constant 0 : index
      %c0_11 = arith.constant 0 : index
      %36 = vector.load %arg4[%c0_10, %c0_11] : memref<8x128xf32, #tpu.memory_space<vmem>>, vector<8x128xf32>
      %c0_12 = arith.constant 0 : index
      %c0_13 = arith.constant 0 : index
      %37 = vector.load %arg5[%c0_12, %c0_13] : memref<8x128xf32, #tpu.memory_space<vmem>>, vector<8x128xf32>
      %cst_14 = arith.constant 0.000000e+00 : f32
      %38 = vector.broadcast %cst_14 : f32 to vector<8x128xf32>
      %39 = arith.maximumf %36, %38 : vector<8x128xf32>
      %40 = arith.mulf %36, %37 : vector<8x128xf32>
      %41 = arith.subf %39, %40 : vector<8x128xf32>
      %42 = math.absf %36 : vector<8x128xf32>
      %cst_15 = arith.constant 0.000000e+00 : f32
      %43 = vector.broadcast %cst_15 : f32 to vector<8x128xf32>
      %44 = arith.subf %43, %42 : vector<8x128xf32>
      %45 = math.exp %44 : vector<8x128xf32>
      %46 = math.log1p %45 : vector<8x128xf32>
      %47 = arith.addf %41, %46 : vector<8x128xf32>
      %c0_16 = arith.constant 0 : index
      %c0_17 = arith.constant 0 : index
      %48 = vector.load %arg6[%c0_16, %c0_17] : memref<8x128xf32, #tpu.memory_space<vmem>>, vector<8x128xf32>
      %49 = arith.addf %35, %47 : vector<8x128xf32>
      %50 = arith.mulf %48, %49 : vector<8x128xf32>
      %c8_i32 = arith.constant 8 : i32
      %51 = arith.muli %4, %c8_i32 : i32
      %52 = tpu.iota {dimensions = array<i32: 0>} : vector<8x128xi32>
      %53 = vector.broadcast %51 : i32 to vector<8x128xi32>
      %54 = arith.addi %53, %52 : vector<8x128xi32>
      %c8_i32_18 = arith.constant 8 : i32
      %55 = vector.broadcast %c8_i32_18 : i32 to vector<8x128xi32>
      %56 = arith.cmpi slt, %54, %55 : vector<8x128xi32>
      %cst_19 = arith.constant 0.000000e+00 : f32
      %57 = vector.broadcast %cst_19 : f32 to vector<8x128xf32>
      %58 = arith.select %56, %50, %57 : vector<8x128xi1>, vector<8x128xf32>
      %c0_20 = arith.constant 0 : index
      %c0_21 = arith.constant 0 : index
      %c0_22 = arith.constant 0 : index
      %59 = vector.load %arg7[%c0_20, %c0_21, %c0_22] : memref<1x8x128xf32, #tpu.memory_space<vmem>>, vector<1x8x128xf32>
      %60 = vector.shape_cast %59 : vector<1x8x128xf32> to vector<8x128xf32>
      %61 = vector.shape_cast %58 : vector<8x128xf32> to vector<1x8x128xf32>
      %cst_23 = arith.constant dense<0.000000e+00> : vector<8x128xf32>
      %62 = vector.multi_reduction <add>, %61, %cst_23 [0] : vector<1x8x128xf32> to vector<8x128xf32>
      %63 = arith.addf %60, %62 : vector<8x128xf32>
      %c0_24 = arith.constant 0 : index
      %c0_25 = arith.constant 0 : index
      %c0_26 = arith.constant 0 : index
      %64 = vector.load %arg7[%c0_24, %c0_25, %c0_26] : memref<1x8x128xf32, #tpu.memory_space<vmem>>, vector<1x8x128xf32>
      %65 = vector.shape_cast %64 : vector<1x8x128xf32> to vector<8x128xf32>
      %66 = vector.shape_cast %63 : vector<8x128xf32> to vector<1x8x128xf32>
      tpu.vector_store %arg7[%c0_24, %c0_25, %c0_26], %66 {strides = array<i32>} : memref<1x8x128xf32, #tpu.memory_space<vmem>>, vector<1x8x128xf32>,
    } else {
    }
    return
  }
  func.func @transform_0(%arg0: i32, %arg1: i32) -> (i32, i32) {
    %c1_i32 = arith.constant 1 : i32
    %0 = arith.muli %arg0, %c1_i32 : i32
    %1 = arith.addi %0, %arg1 : i32
    %c0_i32 = arith.constant 0 : i32
    %2 = arith.minsi %1, %c0_i32 : i32
    %c0_i32_0 = arith.constant 0 : i32
    %c0_i32_1 = arith.constant 0 : i32
    return %2, %c0_i32_0 : i32, i32
  }
  func.func @transform_1(%arg0: i32, %arg1: i32) -> (i32, i32) {
    %c1_i32 = arith.constant 1 : i32
    %0 = arith.muli %arg0, %c1_i32 : i32
    %1 = arith.addi %0, %arg1 : i32
    %c0_i32 = arith.constant 0 : i32
    %2 = arith.minsi %1, %c0_i32 : i32
    %c0_i32_0 = arith.constant 0 : i32
    %c0_i32_1 = arith.constant 0 : i32
    return %2, %c0_i32_0 : i32, i32
  }
  func.func @transform_2(%arg0: i32, %arg1: i32) -> (i32, i32) {
    %c1_i32 = arith.constant 1 : i32
    %0 = arith.muli %arg0, %c1_i32 : i32
    %1 = arith.addi %0, %arg1 : i32
    %c0_i32 = arith.constant 0 : i32
    %2 = arith.minsi %1, %c0_i32 : i32
    %c0_i32_0 = arith.constant 0 : i32
    %c0_i32_1 = arith.constant 0 : i32
    return %2, %c0_i32_0 : i32, i32
  }
  func.func @transform_3(%arg0: i32, %arg1: i32) -> (i32, i32) {
    %c1_i32 = arith.constant 1 : i32
    %0 = arith.muli %arg0, %c1_i32 : i32
    %1 = arith.addi %0, %arg1 : i32
    %c0_i32 = arith.constant 0 : i32
    %2 = arith.minsi %1, %c0_i32 : i32
    %c0_i32_0 = arith.constant 0 : i32
    %c0_i32_1 = arith.constant 0 : i32
    return %2, %c0_i32_0 : i32, i32
  }
  func.func @transform_4(%arg0: i32, %arg1: i32) -> (i32, i32) {
    %c1_i32 = arith.constant 1 : i32
    %0 = arith.muli %arg0, %c1_i32 : i32
    %1 = arith.addi %0, %arg1 : i32
    %c0_i32 = arith.constant 0 : i32
    %2 = arith.minsi %1, %c0_i32 : i32
    %c0_i32_0 = arith.constant 0 : i32
    %c0_i32_1 = arith.constant 0 : i32
    return %2, %c0_i32_0 : i32, i32
  }
  func.func @transform_5(%arg0: i32, %arg1: i32) -> (i32, i32, i32) {
    %c0_i32 = arith.constant 0 : i32
    %c0_i32_0 = arith.constant 0 : i32
    %c0_i32_1 = arith.constant 0 : i32
    return %arg0, %c0_i32, %c0_i32_0 : i32, i32, i32
  }
}

</mosaic_0001>

<bundles_post_ra>
// kernel: tpu_custom_call.1
= control target key start
LH: loop header
LB: loop body
LE: loop exit
PB: predicated region body
PF: predicated region fallthrough
CT: control target
= control target key end

     0   :  { %s2875_s0 = inlined_call_operand.hbm [shape: f32[8,384], index: 0, kind: input, shape index: {}]   ;;  %s2876_s1 = inlined_call_operand.hbm [shape: f32[8,384], index: 1, kind: input, shape index: {}]   ;;  %s2877_s2 = inlined_call_operand.hbm [shape: f32[8,128], index: 2, kind: input, shape index: {}]   ;;  %s2878_s3 = inlined_call_operand.vmem [shape: f32[8,128], index: 3, kind: input, shape index: {}]   ;;  %s2879_s4 = inlined_call_operand.hbm [shape: f32[8,128], index: 4, kind: input, shape index: {}]   ;;  %s2880_s5 = inlined_call_operand.hbm [shape: f32[2,8,128], index: 5, kind: output, shape index: {}]  }
   0x1   :  { %2950 = sst [smem:[#allocation18_spill]] %s2876_s1 }
   0x2   :  { %10 = vsyncpa [#allocation3], 0 }
   0x3   :  { %12 = vsyncpa [#allocation3 + $0x1], 0 }
   0x4   :  { %13 = vsyncpa [#allocation6], 0 }
   0x5   :  { %15 = vsyncpa [#allocation6 + $0x1], 0 }
   0x6   :  { %16 = vsyncpa [#allocation9], 0 }
   0x7   :  { %18 = vsyncpa [#allocation9 + $0x1], 0 }
   0x8   :  { %19 = vsyncpa [#allocation4], 0 }
   0x9   :  { %21 = vsyncpa [#allocation4 + $0x1], 0  ;;  %s1833_s18 = smov 0   ;;  %s1835_s19 = smov 0  }
   0xa   :  { %s1837_s20 = smov 0   ;;  %s1839_s21 = smov 0  }
   0xb   :  { %s1841_s22 = smov 0   ;;  %s1843_s23 = smov 0  }
   0xc   :  { %s1845_s24 = smov 0   ;;  %s1847_s25 = smov 0  }
   0xd LB: > { %2951 = sst [smem:[#allocation15_spill]] %s1788_s24  ;;  %s1872_s26 = sadd.s32 4294967295, %s1792_s25   ;;  %s1792_s25 = sphi %s1847_s25, %s27_s25   ;;  %s1788_s24 = sphi %s1845_s24, %s3134_s24   ;;  %s1784_s23 = sphi %s1843_s23, %s3133_s23   ;;  %s1780_s22 = sphi %s1841_s22, %s2865_s22   ;;  %s1776_s21 = sphi %s1839_s21, %s3138_s21   ;;  %s1772_s20 = sphi %s1837_s20, %s3137_s20   ;;  %s1768_s19 = sphi %s1835_s19, %s3136_s19   ;;  %s1764_s18 = sphi %s1833_s18, %s3135_s18  }
   0xe   : > { %s1170_s27 = sadd.s32 4294967294, %s1792_s25   ;;  %s39_s28 = sadd.s32 1, %s1788_s24 }
   0xf   : > { %p41_p0 = scmp.ge.s32.totalorder %s39_s28, 2  ;;  %p1761_p1 = scmp.ne.s32.totalorder %s1780_s22, 0 }
  0x10   : > { %p60_p2 = scmp.eq.s32.totalorder %s1792_s25, 0  ;;  %p65_p3 = scmp.ne.s32.totalorder %s1780_s22, %s1776_s21 }
  0x11   : > { %s3140_s28 = smov (%p41_p0, %s39_s28), 0  ;;  %p66_p5 = scmp.eq.s32.totalorder %s1872_s26, 0 }
  0x12   : > { %2952 = sst [smem:[#allocation16_spill]] %s3140_s28  ;;  %p1881_p4 = por %p1761_p1, %p60_p2 }
  0x13   : > { %p1886_p6 = por %p66_p5, %p65_p3  ;;  %s203_s6 = ssub.s32 %s1788_s24, %s3140_s28 }
  0x14   : > { %p204_p7 = scmp.eq.s32.totalorder %s203_s6, 0  ;;  %s206_s7 = sadd.s32 1, %s1772_s20 }
  0x15   : > { %s2954_s30 = scalar_select %p1886_p6, 1, 0 }
  0x16   : > { %s1894_s8 = scalar_select %p204_p7, %s1772_s20, %s206_s7  }
  0x17   : > { %p216_p8 = scmp.ne.s32.totalorder %s1772_s20, %s1768_s19  ;;  %p217_p9 = scmp.eq.s32.totalorder %s1872_s26, 1 }
  0x18   : > { %2955 = sst [smem:[#allocation17_spill]] %s1894_s8  ;;  %p222_p10 = scmp.ne.s32.totalorder %s1768_s19, %s1764_s18 }
  0x19   : > { %p223_p11 = scmp.eq.s32.totalorder %s1170_s27, 1  ;;  %p1901_p12 = por %p217_p9, %p216_p8 }
  0x1a   : > { %p1477_p1 = scmp.lt.s32.totalorder %s1792_s25, 2  ;;  %s265_s12 = sand.u32 1, %s1792_s25  }
  0x1b   : > { %s2956_s9 = scalar_select %p1901_p12, 1, 0 }
  0x1c   : > { %p1906_p0 = por %p223_p11, %p222_p10  ;;  %p1913_p2 = pnand %p1477_p1, %p1881_p4 }
  0x1d   : > { %s1794_s13 = smov [#allocation5]   ;;  %s1920_s15 = scalar_lea.sflag [#allocation6], %s265_s12 }
  0x1e   : > { %s2957_s10 = scalar_select %p1906_p0, 1, 0 }
  0x1f   : > { %s2958_s11 = scalar_select %p1913_p2, 1, 0 }
  0x20   : > { %s280_s14 = sshll.u32 %s1794_s13, 4  ;;  %s2959_s1 = sld [smem:[#allocation18_spill]]  ;;  %s281_s14 = int_to_ptr.vmem [resolvable:$true] %s280_s14 }
  0x21   : > { %p1930_p7 = pneg %p1913_p2 }
  0x26   : > { %s1561_s21 = scalar_lea.hbm %s2959_s1, 384 }
  0x27   : > { %p1562_p4 = scmp.ne.s32.totalorder %s2959_s1, %s1561_s21  ;;  %p1568_p10 = scmp.lt.u32.totalorder %s1561_s21, %s1561_s21 }
  0x28   : > { %p1570_p11 = scmp.lt.u32.totalorder %s1561_s21, %s2959_s1 }
  0x29   : > { %p1564_p8 = pnand %p1930_p7, %p1562_p4 }
  0x2a   : > { %p1571_p1 = por %p1570_p11, %p1568_p10 }
  0x2b   : > { %p1565_p9 = pneg %p1564_p8 }
  0x2d   : > { %p1572_p13 = pnand %p1571_p1, %p1565_p9 }
  0x2f   : > { %1575 = shalt.err (!%p1572_p13)
}
  0x30   : > { %s1576_s13 = scalar_lea.vmem %s281_s14, 384  ;;  %s1583_s16 = scalar_lea.vmem %s281_s14, 768 }
  0x31   : > { %p1577_p3 = scmp.ne.s32.totalorder %s281_s14, %s1576_s13  ;;  %p1584_p12 = scmp.lt.s32.totalorder %s281_s14, %s281_s14 }
  0x32   : > { %p1585_p6 = scmp.lt.s32.totalorder %s1583_s16, %s1576_s13 }
  0x33   : > { %p1579_p5 = pnand %p1577_p3, %p1930_p7 }
  0x34   : > { %p1586_p2 = por %p1585_p6, %p1584_p12 }
  0x35   : > { %p1580_p0 = pneg %p1579_p5 }
  0x37   : > { %p1587_p4 = pnand %p1586_p2, %p1580_p0 }
  0x39   : > { %1590 = shalt.err (!%p1587_p4)
}
  0x3a   : > { %p2961_p8 = scmp.ne.s32.totalorder %s2958_s11, 0  ;;  %p2962_p13 = scmp.lt.s32.totalorder %s1792_s25, 3 }
  0x3b   : > { %p2963_p9 = scmp.ge.s32.totalorder %s1792_s25, 1  ;;  %s1795_s6 = smov [#allocation2]  }
  0x3c   : > { %1466 = dma.hbm_to_vmem [thread:$0]  (!%p2961_p8), %s2959_s1, 384, %s281_s14, %s1920_s15  }
  0x3d   : > { %p1951_p3 = pnand %p2963_p9, %p2962_p13  ;;  %s258_s7 = sshll.u32 %s1795_s6, 4  ;;  %s259_s7 = int_to_ptr.vmem [resolvable:$true] %s258_s7 }
  0x3e   : > { %s1591_s16 = scalar_lea.hbm %s2875_s0, 384 }
  0x3f   : > { %s2964_s27 = scalar_select %p1951_p3, 1, 0 }
  0x40   : > { %p1592_p6 = scmp.ne.s32.totalorder %s2875_s0, %s1591_s16  ;;  %p1598_p2 = scmp.lt.u32.totalorder %s1591_s16, %s1591_s16 }
  0x41   : > { %p1600_p5 = scmp.lt.u32.totalorder %s1591_s16, %s2875_s0 }
  0x42   : > { %p1594_p12 = pnand %p1592_p6, %p1930_p7 }
  0x43   : > { %p1601_p10 = por %p1600_p5, %p1598_p2 }
  0x44   : > { %p1595_p0 = pneg %p1594_p12 }
  0x46   : > { %p1602_p11 = pnand %p1601_p10, %p1595_p0 }
  0x48   : > { %1605 = shalt.err (!%p1602_p11)
}
  0x49   : > { %s1606_s21 = scalar_lea.vmem %s259_s7, 384  ;;  %s1613_s6 = scalar_lea.vmem %s259_s7, 768 }
  0x4a   : > { %p1607_p1 = scmp.ne.s32.totalorder %s259_s7, %s1606_s21  ;;  %p1614_p9 = scmp.lt.s32.totalorder %s259_s7, %s259_s7 }
  0x4b   : > { %p1615_p3 = scmp.lt.s32.totalorder %s1613_s6, %s1606_s21 }
  0x4c   : > { %p1609_p4 = pnand %p1607_p1, %p1930_p7 }
  0x4d   : > { %p1616_p8 = por %p1615_p3, %p1614_p9 }
  0x4e   : > { %p1610_p13 = pneg %p1609_p4 }
  0x50   : > { %p1617_p6 = pnand %p1616_p8, %p1610_p13 }
  0x52   : > { %1620 = shalt.err (!%p1617_p6)
}
  0x53   : > { %p2965_p12 = scmp.ne.s32.totalorder %s2958_s11, 0  ;;  %s1796_s12 = smov [#allocation7]  }
  0x54   : > { %s301_s13 = sshll.u32 %s1796_s12, 4  ;;  %s1621_s17 = scalar_lea.hbm %s2877_s2, 128  ;;  %s302_s13 = int_to_ptr.vmem [resolvable:$true] %s301_s13 }
  0x55   : > { %1463 = dma.hbm_to_vmem [thread:$0]  (!%p2965_p12), %s2875_s0, 384, %s259_s7, [#allocation3]  }
  0x56   : > { %p1622_p3 = scmp.ne.s32.totalorder %s2877_s2, %s1621_s17  ;;  %p1628_p2 = scmp.lt.u32.totalorder %s1621_s17, %s1621_s17 }
  0x57   : > { %p1630_p5 = scmp.lt.u32.totalorder %s1621_s17, %s2877_s2 }
  0x58   : > { %p1624_p8 = pnand %p1622_p3, %p1930_p7 }
  0x59   : > { %p1631_p10 = por %p1630_p5, %p1628_p2 }
  0x5a   : > { %p1625_p0 = pneg %p1624_p8 }
  0x5c   : > { %p1632_p11 = pnand %p1631_p10, %p1625_p0 }
  0x5e   : > { %1635 = shalt.err (!%p1632_p11)
}
  0x5f   : > { %s1636_s7 = scalar_lea.vmem %s302_s13, 128  ;;  %s1643_s24 = scalar_lea.vmem %s302_s13, 256 }
  0x60   : > { %p1637_p1 = scmp.ne.s32.totalorder %s302_s13, %s1636_s7  ;;  %p1644_p9 = scmp.lt.s32.totalorder %s302_s13, %s302_s13 }
  0x61   : > { %p1645_p6 = scmp.lt.s32.totalorder %s1643_s24, %s1636_s7 }
  0x62   : > { %p1639_p4 = pnand %p1637_p1, %p1930_p7 }
  0x63   : > { %p1646_p12 = por %p1645_p6, %p1644_p9 }
  0x64   : > { %p1640_p13 = pneg %p1639_p4 }
  0x66   : > { %p1647_p3 = pnand %p1646_p12, %p1640_p13 }
  0x68   : > { %1650 = shalt.err (!%p1647_p3)
}
  0x69   : > { %p2966_p8 = scmp.ne.s32.totalorder %s2958_s11, 0  ;;  %s1797_s28 = smov [#allocation8]  }
  0x6a   : > { %s335_s12 = sshll.u32 %s1797_s28, 4  ;;  %s1651_s17 = scalar_lea.hbm %s2879_s4, 128  ;;  %s336_s12 = int_to_ptr.vmem [resolvable:$true] %s335_s12 }
  0x6b   : > { %1469 = dma.hbm_to_vmem [thread:$0]  (!%p2966_p8), %s2877_s2, 128, %s302_s13, %s1920_s15  }
  0x6c   : > { %p1652_p12 = scmp.ne.s32.totalorder %s2879_s4, %s1651_s17  ;;  %p1658_p5 = scmp.lt.u32.totalorder %s1651_s17, %s1651_s17 }
  0x6d   : > { %p1660_p10 = scmp.lt.u32.totalorder %s1651_s17, %s2879_s4 }
  0x6e   : > { %p1654_p0 = pnand %p1652_p12, %p1930_p7 }
  0x6f   : > { %p1661_p11 = por %p1660_p10, %p1658_p5 }
  0x70   : > { %p1655_p2 = pneg %p1654_p0 }
  0x72   : > { %p1662_p1 = pnand %p1661_p11, %p1655_p2 }
  0x74   : > { %1665 = shalt.err (!%p1662_p1)
}
  0x75   : > { %s1666_s15 = scalar_lea.vmem %s336_s12, 128  ;;  %s1673_s13 = scalar_lea.vmem %s336_s12, 256 }
  0x76   : > { %p1667_p4 = scmp.ne.s32.totalorder %s336_s12, %s1666_s15  ;;  %p1674_p6 = scmp.lt.s32.totalorder %s336_s12, %s336_s12 }
  0x77   : > { %p1675_p3 = scmp.lt.s32.totalorder %s1673_s13, %s1666_s15 }
  0x78   : > { %p1669_p13 = pnand %p1667_p4, %p1930_p7 }
  0x79   : > { %p1676_p8 = por %p1675_p3, %p1674_p6 }
  0x7a   : > { %p1670_p9 = pneg %p1669_p13 }
  0x7c   : > { %p1677_p12 = pnand %p1676_p8, %p1670_p9 }
  0x7e   : > { %1680 = shalt.err (!%p1677_p12)
}
  0x7f   : > { %p2967_p0 = scmp.ne.s32.totalorder %s2958_s11, 0  ;;  %p2968_p2 = scmp.ne.s32.totalorder %s2964_s27, 0 }
  0x80   : > { %s346_s29 = sand.u32 (!%p2968_p2), 1, %s1780_s22   ;;  %p2969_p7 = scmp.ne.s32.totalorder (!%p2968_p2), %s2954_s30, 0 }
  0x81   : > { %1472 = dma.hbm_to_vmem [thread:$0]  (!%p2967_p0), %s2879_s4, 128, %s336_s12, [#allocation9]  }
  0x82   : > { %344 = sbr.rel (%p2968_p2) target bundleno = 532 (0x214), region = 40  ;;  %s347_s16 = scalar_lea.sflag (!%p2968_p2), [#allocation3], %s346_s29 }
  0x83   : > { %s1449_s28 = smul.u32 (!%p2968_p2), 24, %s346_s29 }
  0x85   : > { %s2013_s14 = scalar_lea.vmem (!%p2968_p2), [#allocation2], %s1449_s28 }
  0x89   : > { %1746 = dma.done.wait (%p2969_p7), %s347_s16, 384  }
  0x8a   : > { %1748 = vsyncadd (%p2969_p7), %s347_s16, 4294966912  ;;  %s355_s11 = sand.u32 1, %s1872_s26   ;;  %s2020_s12 = scalar_lea.vmem [#allocation5], %s1449_s28 }
  0x8b   : > { %s356_s17 = scalar_lea.sflag [#allocation6], %s355_s11 }
  0x8c   : > { %1750 = dma.done.wait (%p2969_p7), %s356_s17, 512  }
  0x8d   : > { %1752 = vsyncadd (%p2969_p7), %s356_s17, 4294966784  ;;  %s1180_s27 = sshll.u32 %s346_s29, 3  ;;  %s374_s6 = scalar_lea.sflag [#allocation9], %s346_s29 }
  0x8e   : > { %s2026_s21 = scalar_lea.vmem [#allocation7], %s1180_s27  ;;  %s2028_s7 = scalar_lea.vmem [#allocation8], %s1180_s27 }
  0x8f   : > { %1754 = dma.done.wait (%p2969_p7), %s374_s6, 128  }
  0x90   : > { %1756 = vsyncadd (%p2969_p7), %s374_s6, 4294967168  ;;  %s423_s26 = sand.u32 1, %s1768_s19   ;;  %p436_p8 = scmp.lt.s32.totalorder %s1784_s23, 0  ;;  %v1798_v0 = vmov 0.0  }
  0x91   : > { %s1182_s24 = sshll.u32 %s423_s26, 3  ;;  %p1187_p5 = scmp.ge.s32.totalorder %s1784_s23, 1 }
  0x92   : > { %s437_s15 = scalar_select %p436_p8, %s1784_s23, 0 }
  0x93   : > { %s2039_s13 = scalar_lea.vmem [#allocation10], %s1182_s24  ;;  %458 = sbr.rel (%p1187_p5) target bundleno = 507 (0x1fb), region = 64  ;;  %v471_v1 = vlaneseq (!%p1187_p5)  ;;  %v1799_v2 = vmov (!%p1187_p5), 0.0   ;;  %vm2887_vm0 = vmmov (!%p1187_p5), 0   ;;  %v1801_v15 = vmov (!%p1187_p5), 1.0|1.0  }
  0x94   : > { %453 = vst [vmem:[%s2039_s13] sm:$0xff] %v1798_v0  ;;  %s3142_s15 = smov (!%p436_p8, %s437_s15), 0  ;;  %1399 = vmatprep.subr.bf16.mxu1 (!%p1187_p5), %v1799_v2  ;;  %1415 = vmatprep.mubr.msk.bf16.mxu1 (!%p1187_p5), %vm2887_vm0, %v1799_v2  ;;  %v2974_v16 = vmov (!%p1187_p5), 0  ;;  %v2978_v20 = vmov (!%p1187_p5), 0  ;;  %v2980_v22 = vmov (!%p1187_p5), 0  ;;  %v2982_v24 = vmov (!%p1187_p5), 0  ;;  %v460_v38 = vld [vmem:[%s2013_s14 + $0x8] sm:$0xff] (!%p1187_p5) }
  0x95   : > { %s1186_s1 = sshll.u32 %s3142_s15, 3  ;;  %v2051_v3 = vshrl.u32 (!%p1187_p5), %v471_v1, 7  ;;  %v521_v4 = vand.u32 (!%p1187_p5), 127, %v471_v1  ;;  %v2984_v26 = vmov (!%p1187_p5), 0  ;;  %v2986_v28 = vmov (!%p1187_p5), 0  ;;  %v463_v39 = vld [vmem:[%s2020_s12 + $0x8] sm:$0xff] (!%p1187_p5) }
  0x96   : > { %s2045_s30 = scalar_lea.vmem %s2878_s3, %s1186_s1  ;;  %v2988_v30 = vmov (!%p1187_p5), 0  ;;  %v2990_v32 = vmov (!%p1187_p5), 0  ;;  %v2992_v34 = vmov (!%p1187_p5), 0  ;;  %v2994_v36 = vmov (!%p1187_p5), 0  ;;  %v968_v13 = vld [vmem:[%s2026_s21] sm:$0xff] (!%p1187_p5)  ;;  %s1332_s28 = sshll.u32 (!%p1187_p5), %s1784_s23, 3 }
  0x97   : > { %v488_v5 = vadd.s32 (!%p1187_p5), 128, %v2051_v3  ;;  %v489_v6 = vadd.s32 (!%p1187_p5), 136, %v2051_v3  ;;  %v2055_v7 = vmul.u32 (!%p1187_p5), 3, %v521_v4  ;;  %v504_v8 = vadd.s32 (!%p1187_p5), 256, %v2051_v3 }
  0x98   : > { %v505_v10 = vadd.s32 (!%p1187_p5), 264, %v2051_v3  ;;  %v473_v12 = vadd.s32 (!%p1187_p5), 8, %v2051_v3  ;;  %v490_v14 = vadd.s32 (!%p1187_p5), 144, %v2051_v3  ;;  %v491_v17 = vadd.s32 (!%p1187_p5), 152, %v2051_v3 }
  0x99   : > { %vm539_vm1 = vcmp.ge.s32.totalorder (!%p1187_p5), %v488_v5, %v2055_v7  ;;  %v2060_v9 = vadd.s32 (!%p1187_p5), 3, %v2055_v7  ;;  %vm540_vm2 = vcmp.ge.s32.totalorder (!%p1187_p5), %v489_v6, %v2055_v7  ;;  %vm555_vm6 = vcmp.ge.s32.totalorder (!%p1187_p5), %v504_v8, %v2055_v7 }
  0x9a   : > { %vm556_vm9 = vcmp.ge.s32.totalorder %v505_v10, %v2055_v7  ;;  %vm523_vm13 = vcmp.ge.s32.totalorder %v2051_v3, %v2055_v7  ;;  %v506_v19 = vadd.s32 272, %v2051_v3  ;;  %v507_v21 = vadd.s32 280, %v2051_v3 }
  0x9b   : > { %vm588_vm3 = vcmp.lt.s32.totalorder %v488_v5, %v2060_v9  ;;  %vm589_vm4 = vcmp.lt.s32.totalorder %v489_v6, %v2060_v9  ;;  %vm604_vm7 = vcmp.lt.s32.totalorder %v504_v8, %v2060_v9  ;;  %vm605_vm10 = vcmp.lt.s32.totalorder %v505_v10, %v2060_v9 }
  0x9c   : > { %vm2066_vm5 = vmand %vm539_vm1, %vm588_vm3  ;;  %vm572_vm14 = vcmp.lt.s32.totalorder %v2051_v3, %v2060_v9  ;;  %vm524_vm1 = vcmp.ge.s32.totalorder %v473_v12, %v2055_v7  ;;  %vm591_vm0 = vcmp.lt.s32.totalorder %v491_v17, %v2060_v9  ;;  %v474_v23 = vadd.s32 16, %v2051_v3 }
  0x9d   : > { %vm2073_vm8 = vmand %vm540_vm2, %vm589_vm4  ;;  %vm573_vm2 = vcmp.lt.s32.totalorder %v473_v12, %v2060_v9  ;;  %v475_v25 = vadd.s32 24, %v2051_v3  ;;  %v492_v27 = vadd.s32 160, %v2051_v3  ;;  %v493_v29 = vadd.s32 168, %v2051_v3 }
  0x9e   : > { %vm2889_vm11 = vmpackc.low %vm2073_vm8, %vm2066_vm5  ;;  %v508_v31 = vadd.s32 288, %v2051_v3  ;;  %v509_v33 = vadd.s32 296, %v2051_v3  ;;  %v476_v35 = vadd.s32 32, %v2051_v3  ;;  %v477_v37 = vadd.s32 40, %v2051_v3 }
  0x9f   : > { %1337 = vmatprep.subr.msk.bf16.mxu0 %vm2889_vm11, %v1801_v15  ;;  %vm2090_vm12 = vmand %vm555_vm6, %vm604_vm7  ;;  %vm541_vm6 = vcmp.ge.s32.totalorder %v490_v14, %v2055_v7  ;;  %vm590_vm7 = vcmp.lt.s32.totalorder %v490_v14, %v2060_v9  ;;  %vm558_vm11 = vcmp.ge.s32.totalorder %v507_v21, %v2055_v7  ;;  %v2996_v40 = vmov 0 }
  0xa0   : > { %v2975_v16 = vsel %vm2090_vm12, 4294967295, %v2974_v16  ;;  %vm2099_vm15 = vmand %vm556_vm9, %vm605_vm10  ;;  %vm542_vm10 = vcmp.ge.s32.totalorder %v491_v17, %v2055_v7  ;;  %v494_v41 = vadd.s32 176, %v2051_v3  ;;  %v2998_v42 = vmov 0 }
  0xa1   : > { %vm2888_vm3 = vmpackc.low %vm2099_vm15, %vm2090_vm12  ;;  %vm607_vm12 = vcmp.lt.s32.totalorder %v507_v21, %v2060_v9  ;;  %v495_v43 = vadd.s32 184, %v2051_v3  ;;  %v466_v44 = vsub.f32 %v460_v38, %v463_v39  ;;  %v3000_v45 = vmov 0 }
  0xa2   : > { %1400 = vmatpush3.bf16.msk.msra.mxu1 %vm2888_vm3, %v1801_v15  ;;  %vm2116_vm4 = vmand %vm523_vm13, %vm572_vm14  ;;  %v510_v46 = vadd.s32 304, %v2051_v3  ;;  %v3002_v47 = vmov 0  ;;  %v511_v48 = vadd.s32 312, %v2051_v3  ;;  %v3004_v49 = vmov 0 }
  0xa3   : > { %v2979_v20 = vsel %vm2116_vm4, 4294967295, %v2978_v20  ;;  %vm2123_vm9 = vmand %vm524_vm1, %vm573_vm2  ;;  %1401 = vmatprep.subr.bf16.mxu1 %v1799_v2  ;;  %vm557_vm1 = vcmp.ge.s32.totalorder %v506_v19, %v2055_v7  ;;  %vm606_vm2 = vcmp.lt.s32.totalorder %v506_v19, %v2060_v9  ;;  %v469_v50 = vmul.f32 %v466_v44, %v466_v44  ;;  %v459_v44 = vld [vmem:[%s2013_s14] sm:$0xff] }
  0xa4   : > { %v2981_v22 = vsel %vm2123_vm9, 4294967295, %v2980_v22  ;;  %vm2891_vm13 = vmpackc.low %vm2123_vm9, %vm2116_vm4  ;;  %vm526_vm4 = vcmp.ge.s32.totalorder %v475_v25, %v2055_v7  ;;  %vm575_vm9 = vcmp.lt.s32.totalorder %v475_v25, %v2060_v9  ;;  %v478_v51 = vadd.s32 48, %v2051_v3 }
  0xa5   : > { %1338 = vmatpush3.bf16.msk.msra.mxu0 %vm2891_vm13, %v1801_v15  ;;  %vm2141_vm14 = vmand %vm541_vm6, %vm590_vm7  ;;  %vm525_vm7 = vcmp.ge.s32.totalorder %v474_v23, %v2055_v7  ;;  %v3006_v52 = vmov 0  ;;  %v479_v53 = vadd.s32 56, %v2051_v3  ;;  %v3008_v54 = vmov 0 }
  0xa6   : > { %v2983_v24 = vsel %vm2141_vm14, 4294967295, %v2982_v24  ;;  %vm2148_vm3 = vmand %vm542_vm10, %vm591_vm0  ;;  %vm574_vm10 = vcmp.lt.s32.totalorder %v474_v23, %v2060_v9  ;;  %v496_v55 = vadd.s32 192, %v2051_v3  ;;  %v2307_v56 = vpack.c.bf16 %v469_v50, %v469_v50 }
  0xa7   : > { %v2985_v26 = vsel %vm2148_vm3, 4294967295, %v2984_v26  ;;  %vm2894_vm6 = vmpackc.low %vm2148_vm3, %vm2141_vm14  ;;  %vm560_vm14 = vcmp.ge.s32.totalorder %v509_v33, %v2055_v7  ;;  %vm611_vm3 = vcmp.lt.s32.totalorder %v511_v48, %v2060_v9  ;;  %v3010_v57 = vmov 0 }
  0xa8   : > { %1339 = vmatprep.subr.msk.bf16.mxu0 %vm2894_vm6, %v1801_v15  ;;  %vm2165_vm0 = vmand %vm557_vm1, %vm606_vm2  ;;  %vm592_vm2 = vcmp.lt.s32.totalorder %v492_v27, %v2060_v9  ;;  %v497_v58 = vadd.s32 200, %v2051_v3  ;;  %v3012_v59 = vmov 0  ;;  %v512_v60 = vadd.s32 320, %v2051_v3 }
  0xa9   : > { %v2987_v28 = vsel %vm2165_vm0, 4294967295, %v2986_v28  ;;  %vm2172_vm13 = vmand %vm558_vm11, %vm607_vm12  ;;  %vm543_vm12 = vcmp.ge.s32.totalorder %v492_v27, %v2055_v7  ;;  %v792_v61 = vunpack.c.l.bf16 %v2307_v56  ;;  %v3014_v62 = vmov 0 }
  0xaa   : > { %v2989_v30 = vsel %vm2172_vm13, 4294967295, %v2988_v30  ;;  %vm2895_vm1 = vmpackc.low %vm2172_vm13, %vm2165_vm0  ;;  %vm608_vm0 = vcmp.lt.s32.totalorder %v508_v31, %v2060_v9  ;;  %v513_v63 = vadd.s32 328, %v2051_v3  ;;  %v3016_v0 = vmov 0 }
  0xab   : > { %1402 = vmatpush3.bf16.msk.msra.mxu1 %vm2895_vm1, %v1801_v15  ;;  %vm2189_vm11 = vmand %vm525_vm7, %vm574_vm10  ;;  %vm544_vm1 = vcmp.ge.s32.totalorder %v493_v29, %v2055_v7  ;;  %vm593_vm7 = vcmp.lt.s32.totalorder %v493_v29, %v2060_v9  ;;  %v795_v1 = vsub.f32 %v469_v50, %v792_v61  ;;  %v480_v4 = vadd.s32 64, %v2051_v3 }
  0xac   : > { %v2991_v32 = vsel %vm2189_vm11, 4294967295, %v2990_v32  ;;  %vm2196_vm6 = vmand %vm526_vm4, %vm575_vm9  ;;  %1403 = vmatprep.subr.bf16.mxu1 %v1799_v2  ;;  %vm559_vm9 = vcmp.ge.s32.totalorder %v508_v31, %v2055_v7  ;;  %v3018_v5 = vmov 0  ;;  %v481_v6 = vadd.s32 72, %v2051_v3 }
  0xad   : > { %v2993_v34 = vsel %vm2196_vm6, 4294967295, %v2992_v34  ;;  %vm2899_vm10 = vmpackc.low %vm2196_vm6, %vm2189_vm11  ;;  %vm528_vm6 = vcmp.ge.s32.totalorder %v477_v37, %v2055_v7  ;;  %v798_v8 = vpack.c.bf16 %v795_v1, %v795_v1  ;;  %v3020_v10 = vmov 0 }
  0xae   : > { %1340 = vmatpush3.bf16.msk.msra.mxu0 %vm2899_vm10, %v1801_v15  ;;  %vm2214_vm4 = vmand %vm543_vm12, %vm592_vm2  ;;  %vm609_vm10 = vcmp.lt.s32.totalorder %v509_v33, %v2060_v9  ;;  %vm527_vm2 = vcmp.ge.s32.totalorder %v476_v35, %v2055_v7  ;;  %v498_v12 = vadd.s32 208, %v2051_v3  ;;  %v3022_v14 = vmov 0 }
  0xaf   : > { %v2995_v36 = vsel %vm2214_vm4, 4294967295, %v2994_v36  ;;  %vm2223_vm13 = vmand %vm544_vm1, %vm593_vm7  ;;  %vm576_vm7 = vcmp.lt.s32.totalorder %v476_v35, %v2060_v9  ;;  %832 = vmatprep.mubr.bf16.mxu0 %v798_v8  ;;  %v499_v17 = vadd.s32 216, %v2051_v3  ;;  %v3024_v19 = vmov 0  ;;  %v461_v35 = vld [vmem:[%s2013_s14 + $0x10] sm:$0xff] }
  0xb0   : > { %v2997_v40 = vsel %vm2223_vm13, 4294967295, %v2996_v40  ;;  %vm2903_vm12 = vmpackc.low %vm2223_vm13, %vm2214_vm4  ;;  %vm577_vm4 = vcmp.lt.s32.totalorder %v477_v37, %v2060_v9  ;;  %vm546_vm13 = vcmp.ge.s32.totalorder %v495_v43, %v2055_v7  ;;  %v514_v21 = vadd.s32 336, %v2051_v3  ;;  %v464_v37 = vld [vmem:[%s2020_s12 + $0x10] sm:$0xff] }
  0xb1   : > { %1341 = vmatprep.subr.msk.bf16.mxu0 %vm2903_vm12, %v1801_v15  ;;  %vm2240_vm1 = vmand %vm559_vm9, %vm608_vm0  ;;  %vm594_vm9 = vcmp.lt.s32.totalorder %v494_v41, %v2060_v9  ;;  %v3026_v23 = vmov 0  ;;  %v515_v25 = vadd.s32 344, %v2051_v3  ;;  %v3028_v27 = vmov 0 }
  0xb2   : > { %v2999_v42 = vsel %vm2240_vm1, 4294967295, %v2998_v42  ;;  %vm2247_vm11 = vmand %vm560_vm14, %vm609_vm10  ;;  %vm545_vm10 = vcmp.ge.s32.totalorder %v494_v41, %v2055_v7  ;;  %v482_v29 = vadd.s32 80, %v2051_v3  ;;  %v3030_v31 = vmov 0 }
  0xb3   : > { %v3001_v45 = vsel %vm2247_vm11, 4294967295, %v3000_v45  ;;  %vm2905_vm0 = vmpackc.low %vm2247_vm11, %vm2240_vm1  ;;  %vm562_vm11 = vcmp.ge.s32.totalorder %v511_v48, %v2055_v7  ;;  %v483_v33 = vadd.s32 88, %v2051_v3  ;;  %v3032_v38 = vmov 0 }
  0xb4   : > { %1404 = vmatpush3.bf16.msk.msra.mxu1 %vm2905_vm0, %v1801_v15  ;;  %vm2264_vm14 = vmand %vm527_vm2, %vm576_vm7  ;;  %vm595_vm0 = vcmp.lt.s32.totalorder %v495_v43, %v2060_v9  ;;  %vm610_vm7 = vcmp.lt.s32.totalorder %v510_v46, %v2060_v9  ;;  %v500_v39 = vadd.s32 224, %v2051_v3  ;;  %v3034_v41 = vmov 0 }
  0xb5   : > { %v3003_v47 = vsel %vm2264_vm14, 4294967295, %v3002_v47  ;;  %vm2271_vm12 = vmand %vm528_vm6, %vm577_vm4  ;;  %1405 = vmatprep.subr.bf16.mxu1 %v1799_v2  ;;  %vm561_vm4 = vcmp.ge.s32.totalorder %v510_v46, %v2055_v7  ;;  %v501_v43 = vadd.s32 232, %v2051_v3  ;;  %v462_v46 = vld [vmem:[%s2020_s12] sm:$0xff]  ;;  %v467_v48 = vsub.f32 %v461_v35, %v464_v37 }
  0xb6   : > { %v3005_v49 = vsel %vm2271_vm12, 4294967295, %v3004_v49  ;;  %vm2909_vm2 = vmpackc.low %vm2271_vm12, %vm2264_vm14  ;;  %vm530_vm14 = vcmp.ge.s32.totalorder %v479_v53, %v2055_v7  ;;  %vm579_vm12 = vcmp.lt.s32.totalorder %v479_v53, %v2060_v9  ;;  %v3036_v50 = vmov 0 }
  0xb7   : > { %1342 = vmatpush3.bf16.msk.msra.mxu0 %vm2909_vm2, %v1801_v15  ;;  %vm2289_vm6 = vmand %vm545_vm10, %vm594_vm9  ;;  %vm578_vm9 = vcmp.lt.s32.totalorder %v478_v51, %v2060_v9  ;;  %v3038_v53 = vmov 0  ;;  %v470_v61 = vmul.f32 %v467_v48, %v467_v48  ;;  %v3042_v1 = vmov 0 }
  0xb8   : > { %v3007_v52 = vsel %vm2289_vm6, 4294967295, %v3006_v52  ;;  %vm2296_vm1 = vmand %vm546_vm13, %vm595_vm0  ;;  %vm529_vm0 = vcmp.ge.s32.totalorder %v478_v51, %v2055_v7  ;;  %v516_v51 = vadd.s32 352, %v2051_v3  ;;  %v3050_v37 = vmov 0 }
  0xb9   : > { %v3009_v54 = vsel %vm2296_vm1, 4294967295, %v3008_v54  ;;  %vm2912_vm10 = vmpackc.low %vm2296_vm1, %vm2289_vm6  ;;  %vm548_vm6 = vcmp.ge.s32.totalorder %v497_v58, %v2055_v7  ;;  %vm581_vm1 = vcmp.lt.s32.totalorder %v481_v6, %v2060_v9 }
  0xba   : > { %1343 = vmatprep.subr.msk.bf16.mxu0 %vm2912_vm10, %v1801_v15  ;;  %vm2315_vm13 = vmand %vm561_vm4, %vm610_vm7  ;;  %vm596_vm7 = vcmp.lt.s32.totalorder %v496_v55, %v2060_v9 }
  0xbb   : > { %v3011_v57 = vsel %vm2315_vm13, 4294967295, %v3010_v57  ;;  %vm2322_vm2 = vmand %vm562_vm11, %vm611_vm3  ;;  %vm547_vm11 = vcmp.ge.s32.totalorder %v496_v55, %v2055_v7  ;;  %v517_v55 = vadd.s32 360, %v2051_v3 }
  0xbc   : > { %v3013_v59 = vsel %vm2322_vm2, 4294967295, %v3012_v59  ;;  %vm2914_vm4 = vmpackc.low %vm2322_vm2, %vm2315_vm13  ;;  %vm564_vm2 = vcmp.ge.s32.totalorder %v513_v63, %v2055_v7 }
  0xbd   : > { %1406 = vmatpush3.bf16.msk.msra.mxu1 %vm2914_vm4, %v1801_v15  ;;  %vm2340_vm3 = vmand %vm529_vm0, %vm578_vm9  ;;  %vm597_vm4 = vcmp.lt.s32.totalorder %v497_v58, %v2060_v9  ;;  %vm612_vm9 = vcmp.lt.s32.totalorder %v512_v60, %v2060_v9  ;;  %v465_v58 = vsub.f32 %v459_v44, %v462_v46  ;;  %v3052_v44 = vmov 0 }
  0xbe   : > { %v3015_v62 = vsel %vm2340_vm3, 4294967295, %v3014_v62  ;;  %vm2347_vm10 = vmand %vm530_vm14, %vm579_vm12  ;;  %1407 = vmatprep.subr.bf16.mxu1 %v1799_v2  ;;  %vm563_vm14 = vcmp.ge.s32.totalorder %v512_v60, %v2055_v7  ;;  %v3040_v60 = vmov 0  ;;  %v486_v46 = vadd.s32 112, %v2051_v3 }
  0xbf   : > { %v3017_v0 = vsel %vm2347_vm10, 4294967295, %v3016_v0  ;;  %vm2918_vm0 = vmpackc.low %vm2347_vm10, %vm2340_vm3  ;;  %vm613_vm3 = vcmp.lt.s32.totalorder %v513_v63, %v2060_v9  ;;  %vm532_vm10 = vcmp.ge.s32.totalorder %v481_v6, %v2055_v7  ;;  %v484_v63 = vadd.s32 96, %v2051_v3 }
  0xc0   : > { %1344 = vmatpush3.bf16.msk.msra.mxu0 %vm2918_vm0, %v1801_v15  ;;  %vm2365_vm12 = vmand %vm547_vm11, %vm596_vm7  ;;  %vm580_vm7 = vcmp.lt.s32.totalorder %v480_v4, %v2060_v9  ;;  %v3044_v6 = vmov 0  ;;  %v468_v8 = vmul.f32 %v465_v58, %v465_v58 }
  0xc1   : > { %v3019_v5 = vsel %vm2365_vm12, 4294967295, %v3018_v5  ;;  %vm2372_vm13 = vmand %vm548_vm6, %vm597_vm4  ;;  %vm531_vm4 = vcmp.ge.s32.totalorder %v480_v4, %v2055_v7  ;;  %v485_v4 = vadd.s32 104, %v2051_v3 }
  0xc2   : > { %v3021_v10 = vsel %vm2372_vm13, 4294967295, %v3020_v10  ;;  %vm2921_vm11 = vmpackc.low %vm2372_vm13, %vm2365_vm12  ;;  %vm568_vm12 = vcmp.ge.s32.totalorder %v517_v55, %v2055_v7  ;;  %vm617_vm13 = vcmp.lt.s32.totalorder %v517_v55, %v2060_v9  ;;  %v2559_v35 = vpack.c.bf16 %v468_v8, %v468_v8 }
  0xc3   : > { %1345 = vmatprep.subr.msk.bf16.mxu0 %vm2921_vm11, %v1801_v15  ;;  %vm2389_vm6 = vmand %vm563_vm14, %vm612_vm9  ;;  %vm598_vm9 = vcmp.lt.s32.totalorder %v498_v12, %v2060_v9 }
  0xc4   : > { %v3023_v14 = vsel %vm2389_vm6, 4294967295, %v3022_v14  ;;  %vm2396_vm0 = vmand %vm564_vm2, %vm613_vm3  ;;  %vm549_vm3 = vcmp.ge.s32.totalorder %v498_v12, %v2055_v7  ;;  %v502_v12 = vadd.s32 240, %v2051_v3  ;;  %v791_v55 = vunpack.c.l.bf16 %v2559_v35 }
  0xc5   : > { %v3025_v19 = vsel %vm2396_vm0, 4294967295, %v3024_v19  ;;  %vm2922_vm14 = vmpackc.low %vm2396_vm0, %vm2389_vm6  ;;  %vm614_vm6 = vcmp.lt.s32.totalorder %v514_v21, %v2060_v9 }
  0xc6   : > { %1408 = vmatpush3.bf16.msk.msra.mxu1 %vm2922_vm14, %v1801_v15  ;;  %vm2413_vm2 = vmand %vm531_vm4, %vm580_vm7  ;;  %vm550_vm14 = vcmp.ge.s32.totalorder %v499_v17, %v2055_v7  ;;  %vm599_vm4 = vcmp.lt.s32.totalorder %v499_v17, %v2060_v9  ;;  %v2533_v17 = vpack.c.bf16 %v470_v61, %v470_v61 }
  0xc7   : > { %v3027_v23 = vsel %vm2413_vm2, 4294967295, %v3026_v23  ;;  %vm2420_vm11 = vmand %vm532_vm10, %vm581_vm1  ;;  %1409 = vmatprep.subr.bf16.mxu1 %v1799_v2  ;;  %vm565_vm10 = vcmp.ge.s32.totalorder %v514_v21, %v2055_v7  ;;  %v3046_v21 = vmov 0 }
  0xc8   : > { %v3029_v27 = vsel %vm2420_vm11, 4294967295, %v3028_v27  ;;  %vm2925_vm7 = vmpackc.low %vm2420_vm11, %vm2413_vm2  ;;  %vm582_vm2 = vcmp.lt.s32.totalorder %v482_v29, %v2060_v9 }
  0xc9   : > { %1346 = vmatpush3.bf16.msk.msra.mxu0 %vm2925_vm7, %v1801_v15  ;;  %vm2438_vm1 = vmand %vm549_vm3, %vm598_vm9  ;;  %vm566_vm7 = vcmp.ge.s32.totalorder %v515_v25, %v2055_v7  ;;  %vm615_vm3 = vcmp.lt.s32.totalorder %v515_v25, %v2060_v9  ;;  %v503_v25 = vadd.s32 248, %v2051_v3 }
  0xca   : > { %v3031_v31 = vsel %vm2438_vm1, 4294967295, %v3030_v31  ;;  %vm2447_vm0 = vmand %vm550_vm14, %vm599_vm4  ;;  %vm533_vm4 = vcmp.ge.s32.totalorder %v482_v29, %v2055_v7  ;;  %v3048_v29 = vmov 0 }
  0xcb   : > { %v3033_v38 = vsel %vm2447_vm0, 4294967295, %v3032_v38  ;;  %vm2929_vm9 = vmpackc.low %vm2447_vm0, %vm2438_vm1  ;;  %vm534_vm1 = vcmp.ge.s32.totalorder %v483_v33, %v2055_v7 }
  0xcc   : > { %1347 = vmatprep.subr.msk.bf16.mxu0 %vm2929_vm9, %v1801_v15  ;;  %vm2464_vm14 = vmand %vm565_vm10, %vm614_vm6  ;;  %vm583_vm6 = vcmp.lt.s32.totalorder %v483_v33, %v2060_v9  ;;  %vm600_vm9 = vcmp.lt.s32.totalorder %v500_v39, %v2060_v9  ;;  %v518_v33 = vadd.s32 368, %v2051_v3 }
  0xcd   : > { %v3035_v41 = vsel %vm2464_vm14, 4294967295, %v3034_v41  ;;  %vm2473_vm11 = vmand %vm566_vm7, %vm615_vm3  ;;  %vm551_vm3 = vcmp.ge.s32.totalorder %v500_v39, %v2055_v7  ;;  %v519_v39 = vadd.s32 376, %v2051_v3 }
  0xce   : > { %v3037_v50 = vsel %vm2473_vm11, 4294967295, %v3036_v50  ;;  %vm2932_vm10 = vmpackc.low %vm2473_vm11, %vm2464_vm14  ;;  %vm552_vm14 = vcmp.ge.s32.totalorder %v501_v43, %v2055_v7 }
  0xcf   : > { %1410 = vmatpush3.bf16.msk.msra.mxu1 %vm2932_vm10, %v1801_v15  ;;  %vm2490_vm7 = vmand %vm533_vm4, %vm582_vm2  ;;  %vm601_vm2 = vcmp.lt.s32.totalorder %v501_v43, %v2060_v9  ;;  %vm616_vm10 = vcmp.lt.s32.totalorder %v516_v51, %v2060_v9  ;;  %v793_v43 = vunpack.c.l.bf16 %v2533_v17 }
  0xd0   : > { %v3039_v53 = vsel %vm2490_vm7, 4294967295, %v3038_v53  ;;  %vm2497_vm0 = vmand %vm534_vm1, %vm583_vm6  ;;  %1411 = vmatprep.subr.bf16.mxu1 %v1799_v2  ;;  %vm567_vm6 = vcmp.ge.s32.totalorder %v516_v51, %v2055_v7  ;;  %v487_v51 = vadd.s32 120, %v2051_v3 }
  0xd1   : > { %v3041_v60 = vsel %vm2497_vm0, 4294967295, %v3040_v60  ;;  %vm2936_vm4 = vmpackc.low %vm2497_vm0, %vm2490_vm7  ;;  %vm536_vm7 = vcmp.ge.s32.totalorder %v485_v4, %v2055_v7  ;;  %vm585_vm0 = vcmp.lt.s32.totalorder %v485_v4, %v2060_v9 }
  0xd2   : > { %1348 = vmatpush3.bf16.msk.msra.mxu0 %vm2936_vm4, %v1801_v15  ;;  %vm2515_vm1 = vmand %vm551_vm3, %vm600_vm9  ;;  %vm535_vm3 = vcmp.ge.s32.totalorder %v484_v63, %v2055_v7 }
  0xd3   : > { %v3043_v1 = vsel %vm2515_vm1, 4294967295, %v3042_v1  ;;  %vm2522_vm11 = vmand %vm552_vm14, %vm601_vm2  ;;  %vm584_vm2 = vcmp.lt.s32.totalorder %v484_v63, %v2060_v9  ;;  %v796_v63 = vsub.f32 %v470_v61, %v793_v43 }
  0xd4   : > { %v3045_v6 = vsel %vm2522_vm11, 4294967295, %v3044_v6  ;;  %vm2939_vm9 = vmpackc.low %vm2522_vm11, %vm2515_vm1  ;;  %vm570_vm1 = vcmp.ge.s32.totalorder %v519_v39, %v2055_v7  ;;  %vm587_vm11 = vcmp.lt.s32.totalorder %v487_v51, %v2060_v9 }
  0xd5   : > { %1349 = vmatprep.subr.msk.bf16.mxu0 %vm2939_vm9, %v1801_v15  ;;  %vm2541_vm14 = vmand %vm567_vm6, %vm616_vm10  ;;  %vm602_vm6 = vcmp.lt.s32.totalorder %v502_v12, %v2060_v9 }
  0xd6   : > { %v3047_v21 = vsel %vm2541_vm14, 4294967295, %v3046_v21  ;;  %vm2548_vm4 = vmand %vm568_vm12, %vm617_vm13  ;;  %vm553_vm12 = vcmp.ge.s32.totalorder %v502_v12, %v2055_v7  ;;  %v794_v12 = vsub.f32 %v468_v8, %v791_v55 }
  0xd7   : > { %v3049_v29 = vsel %vm2548_vm4, 4294967295, %v3048_v29  ;;  %vm2940_vm10 = vmpackc.low %vm2548_vm4, %vm2541_vm14  ;;  %vm618_vm14 = vcmp.lt.s32.totalorder %v518_v33, %v2060_v9 }
  0xd8   : > { %1412 = vmatpush3.bf16.msk.msra.mxu1 %vm2940_vm10, %v1801_v15  ;;  %vm2567_vm13 = vmand %vm535_vm3, %vm584_vm2  ;;  %vm554_vm10 = vcmp.ge.s32.totalorder %v503_v25, %v2055_v7  ;;  %vm603_vm3 = vcmp.lt.s32.totalorder %v503_v25, %v2060_v9  ;;  %v799_v25 = vpack.c.bf16 %v796_v63, %v796_v63 }
  0xd9   : > { %v3051_v37 = vsel %vm2567_vm13, 4294967295, %v3050_v37  ;;  %vm2575_vm9 = vmand %vm536_vm7, %vm585_vm0  ;;  %1413 = vmatprep.subr.bf16.mxu1 %v1799_v2  ;;  %vm569_vm7 = vcmp.ge.s32.totalorder %v518_v33, %v2055_v7 }
  0xda   : > { %v3053_v44 = vsel %vm2575_vm9, 4294967295, %v3052_v44  ;;  %vm2944_vm2 = vmpackc.low %vm2575_vm9, %vm2567_vm13  ;;  %vm538_vm9 = vcmp.ge.s32.totalorder %v487_v51, %v2055_v7 }
  0xdb   : > { %1350 = vmatpush3.bf16.msk.msra.mxu0 %vm2944_vm2, %v1801_v15  ;;  %vm2593_vm0 = vmand %vm553_vm12, %vm602_vm6  ;;  %vm619_vm2 = vcmp.lt.s32.totalorder %v519_v39, %v2060_v9  ;;  %vm537_vm6 = vcmp.ge.s32.totalorder %v486_v46, %v2055_v7 }
  0xdc   : > { %vm2601_vm4 = vmand %vm554_vm10, %vm603_vm3  ;;  %vm586_vm3 = vcmp.lt.s32.totalorder %v486_v46, %v2060_v9  ;;  %v797_v9 = vpack.c.bf16 %v794_v12, %v794_v12 }
  0xdd   : > { %vm1266_vm12 = vmpackc.low %vm2601_vm4, %vm2593_vm0 }
  0xde   : > { %1351 = vmatprep.subr.msk.bf16.mxu0 %vm1266_vm12, %v1801_v15  ;;  %vm2617_vm10 = vmand %vm569_vm7, %vm618_vm14 }
  0xdf   : > { %vm2623_vm13 = vmand %vm570_vm1, %vm619_vm2 }
  0xe0   : > { %vm2949_vm14 = vmpackc.low %vm2623_vm13, %vm2617_vm10 }
  0xe1   : > { %1414 = vmatpush3.bf16.msk.msra.mxu1 %vm2949_vm14, %v1801_v15  ;;  %vm2639_vm1 = vmand %vm537_vm6, %vm586_vm3  ;;  %vm3069_vm3 = vmmov 0   ;;  %vm3071_vm14 = vnez %v2979_v20 }
  0xe2   : > { %vm2643_vm2 = vmand %vm538_vm9, %vm587_vm11  ;;  %1419 = vmatprep.subr.bf16.mxu1 %v1799_v2  ;;  %vm3067_vm9 = vnez %v2975_v16 }
  0xe3   : > { %vm2948_vm7 = vmpackc.low %vm2643_vm2, %vm2639_vm1 }
  0xe4   : > { %1352 = vmatpush3.bf16.msk.msra.mxu0 %vm2948_vm7, %v1801_v15  ;;  %1416 = vmatmul.mubr.bf16.vlgmr.msra.gmra.mrb[0].mxu1 %v799_v25  ;;  %vm3066_vm11 = vmpackc.low %vm2073_vm8, %vm2066_vm5  ;;  %vm3070_vm7 = vnez %v2981_v22  ;;  %vm3073_vm8 = vnez %v2985_v26  ;;  %v973_v22 = vand.u32 2147483647, %v968_v13 }
  0xe5   : > { %1368 = vmatprep.subr.msk.bf16.mxu0 %vm3066_vm11, %v1801_v15  ;;  %vm3068_vm6 = vmpackc.low %vm2099_vm15, %vm3067_vm9  ;;  %1435 = vmatprep.mubr.msk.bf16.mxu1 %vm3069_vm3, %v1799_v2  ;;  %vm3074_vm15 = vnez %v2983_v24  ;;  %vm3076_vm9 = vnez %v2989_v30 }
  0xe6   : > { %1420 = vmatpush3.bf16.msk.msra.mxu1 %vm3068_vm6, %v1801_v15  ;;  %vm3072_vm5 = vmpackc.low %vm3070_vm7, %vm3071_vm14  ;;  %vm3077_vm6 = vnez %v2987_v28  ;;  %vm3079_vm14 = vnez %v2993_v34  ;;  %vm3080_vm7 = vnez %v2991_v32  ;;  %v974_v24 = vsub.f32 0.0, %v973_v22 }
  0xe7   : > { %1421 = vmatprep.subr.bf16.mxu1 %v1799_v2  ;;  %833 = vmatmul.mubr.bf16.vlgmr.msra.gmra.mrb[0].mxu0 %v797_v9  ;;  %vm3075_vm11 = vmpackc.low %vm3073_vm8, %vm3074_vm15  ;;  %vm3082_vm8 = vnez %v2997_v40  ;;  %vm3083_vm15 = vnez %v2995_v36 }
  0xe8   : > { %1369 = vmatpush3.bf16.msk.msra.mxu0 %vm3072_vm5, %v1801_v15  ;;  %912 = vmatprep.mubr.bf16.mxu0 %v2307_v56  ;;  %vm3078_vm3 = vmpackc.low %vm3076_vm9, %vm3077_vm6  ;;  %vm3085_vm9 = vnez %v3001_v45  ;;  %vm3086_vm6 = vnez %v2999_v42  ;;  %v975_v26 = vmul.f32 1.442695, %v974_v24 }
  0xe9   : > { %1370 = vmatprep.subr.msk.bf16.mxu0 %vm3075_vm11, %v1801_v15  ;;  %vm3081_vm5 = vmpackc.low %vm3079_vm14, %vm3080_vm7  ;;  %vm3088_vm14 = vnez %v3005_v49  ;;  %vm3089_vm7 = vnez %v3003_v47 }
  0xea   : > { %1422 = vmatpush3.bf16.msk.msra.mxu1 %vm3078_vm3, %v1801_v15  ;;  %vm3084_vm11 = vmpackc.low %vm3082_vm8, %vm3083_vm15  ;;  %vm3091_vm8 = vnez %v3009_v54  ;;  %vm3092_vm15 = vnez %v3007_v52  ;;  %1555 = vpow2.f32 %v975_v26 }
  0xeb   : > { %1423 = vmatprep.subr.bf16.mxu1 %v1799_v2  ;;  %vm3087_vm3 = vmpackc.low %vm3085_vm9, %vm3086_vm6  ;;  %vm3094_vm9 = vnez %v3013_v59  ;;  %vm3095_vm6 = vnez %v3011_v57  ;;  %v969_v59 = vld [vmem:[%s2045_s30] sm:$0xff] }
  0xec   : > { %1371 = vmatpush3.bf16.msk.msra.mxu0 %vm3081_vm5, %v1801_v15  ;;  %vm3090_vm5 = vmpackc.low %vm3088_vm14, %vm3089_vm7  ;;  %vm3097_vm14 = vnez %v3017_v0  ;;  %vm3098_vm7 = vnez %v3015_v62 }
  0xed   : > { %1372 = vmatprep.subr.msk.bf16.mxu0 %vm3084_vm11, %v1801_v15  ;;  %vm3093_vm11 = vmpackc.low %vm3091_vm8, %vm3092_vm15  ;;  %vm3100_vm8 = vnez %v3021_v10  ;;  %vm3101_vm15 = vnez %v3019_v5  ;;  %v970_v10 = vmax.f32 %v968_v13, 0.0 }
  0xee   : > { %1424 = vmatpush3.bf16.msk.msra.mxu1 %vm3087_vm3, %v1801_v15  ;;  %vm3096_vm3 = vmpackc.low %vm3094_vm9, %vm3095_vm6  ;;  %vm3103_vm9 = vnez %v3025_v19  ;;  %vm3104_vm6 = vnez %v3023_v14  ;;  %v971_v14 = vmul.f32 %v969_v59, %v968_v13 }
  0xef   : > { %1425 = vmatprep.subr.bf16.mxu1 %v1799_v2 }
  0xf0   : > { %1373 = vmatpush3.bf16.msk.msra.mxu0 %vm3090_vm5, %v1801_v15  ;;  %vm3099_vm5 = vmpackc.low %vm3097_vm14, %vm3098_vm7  ;;  %vm3106_vm14 = vnez %v3029_v27  ;;  %vm3107_vm7 = vnez %v3027_v23  ;;  %v972_v27 = vsub.f32 %v970_v10, %v971_v14 }
  0xf1   : > { %1374 = vmatprep.subr.msk.bf16.mxu0 %vm3093_vm11, %v1801_v15  ;;  %vm3102_vm11 = vmpackc.low %vm3100_vm8, %vm3101_vm15  ;;  %vm3109_vm8 = vnez %v3033_v38  ;;  %vm3110_vm15 = vnez %v3031_v31  ;;  %v991_v38 = vstv %s1332_s28 }
  0xf2   : > { %1426 = vmatpush3.bf16.msk.msra.mxu1 %vm3096_vm3, %v1801_v15  ;;  %vm3105_vm3 = vmpackc.low %vm3103_vm9, %vm3104_vm6  ;;  %vm3112_vm9 = vnez %v3037_v50  ;;  %vm3113_vm6 = vnez %v3035_v41 }
  0xf3   : > { %1427 = vmatprep.subr.bf16.mxu1 %v1799_v2 }
  0xf4   : > { %1375 = vmatpush3.bf16.msk.msra.mxu0 %vm3099_vm5, %v1801_v15  ;;  %vm3108_vm5 = vmpackc.low %vm3106_vm14, %vm3107_vm7  ;;  %vm3115_vm14 = vnez %v3041_v60  ;;  %vm3116_vm7 = vnez %v3039_v53  ;;  %v1556_v28 = vpop.eup %1555 }
  0xf5   : > { %1376 = vmatprep.subr.msk.bf16.mxu0 %vm3102_vm11, %v1801_v15  ;;  %vm3111_vm11 = vmpackc.low %vm3109_vm8, %vm3110_vm15  ;;  %vm3118_vm8 = vnez %v3045_v6  ;;  %vm3119_vm15 = vnez %v3043_v1  ;;  %v977_v32 = vadd.f32 1.0, %v1556_v28  ;;  %v980_v56 = vmul.f32 -0.5, %v1556_v28 }
  0xf6   : > { %1428 = vmatpush3.bf16.msk.msra.mxu1 %vm3105_vm3, %v1801_v15  ;;  %vm3114_vm3 = vmpackc.low %vm3112_vm9, %vm3113_vm6  ;;  %vm3121_vm9 = vnez %v3049_v29  ;;  %vm3122_vm6 = vnez %v3047_v21  ;;  %v983_v5 = vand.u32 2147483647, %v1556_v28  ;;  %v992_v1 = vadd.s32 %v991_v38, %v2051_v3 }
  0xf7   : > { %1429 = vmatprep.subr.bf16.mxu1 %v1799_v2  ;;  %1557 = vlog2.f32 %v977_v32  ;;  %v981_v62 = vadd.f32 1.0, %v980_v56 }
  0xf8   : > { %1377 = vmatpush3.bf16.msk.msra.mxu0 %vm3108_vm5, %v1801_v15  ;;  %vm3117_vm5 = vmpackc.low %vm3115_vm14, %vm3116_vm7  ;;  %vm3124_vm14 = vnez %v3053_v44  ;;  %vm3125_vm7 = vnez %v3051_v37  ;;  %vm984_vm4 = vcmp.lt.f32.partialorder %v983_v5, 0.0004427343 }
  0xf9   : > { %1378 = vmatprep.subr.msk.bf16.mxu0 %vm3111_vm11, %v1801_v15  ;;  %vm3120_vm11 = vmpackc.low %vm3118_vm8, %vm3119_vm15  ;;  %v982_v23 = vmul.f32 %v1556_v28, %v981_v62 }
  0xfa   : > { %1430 = vmatpush3.bf16.msk.msra.mxu1 %vm3114_vm3, %v1801_v15  ;;  %vm3123_vm3 = vmpackc.low %vm3121_vm9, %vm3122_vm6 }
  0xfb   : > { %1431 = vmatprep.subr.bf16.mxu1 %v1799_v2  ;;  %vm3127_vm8 = vmpackc.low %vm2623_vm13, %vm2617_vm10 }
  0xfc   : > { %1379 = vmatpush3.bf16.msk.msra.mxu0 %vm3117_vm5, %v1801_v15  ;;  %vm3126_vm5 = vmpackc.low %vm3124_vm14, %vm3125_vm7 }
  0xfd   : > { %1380 = vmatprep.subr.msk.bf16.mxu0 %vm3120_vm11, %v1801_v15  ;;  %vm3128_vm15 = vmpackc.low %vm2643_vm2, %vm2639_vm1 }
  0xfe   : > { %1432 = vmatpush3.bf16.msk.msra.mxu1 %vm3123_vm3, %v1801_v15 }
  0xff   : > { %1433 = vmatprep.subr.bf16.mxu1 %v1799_v2 }
 0x100   : > { %1381 = vmatpush3.bf16.msk.msra.mxu0 %vm3126_vm5, %v1801_v15 }
 0x101   : > { %1382 = vmatprep.subr.msk.bf16.mxu0 %vm1266_vm12, %v1801_v15  ;;  %v1558_v0 = vpop.eup %1557  ;;  %vm993_vm12 = vcmp.lt.s32.totalorder %v992_v1, 8 }
 0x102   : > { %1434 = vmatpush3.bf16.msk.msra.mxu1 %vm3127_vm8, %v1801_v15  ;;  %v979_v19 = vmul.f32 0.6931472, %v1558_v0 }
 0x104   : > { %1383 = vmatpush3.bf16.msk.msra.mxu0 %vm3128_vm15, %v1801_v15  ;;  %v985_v31 = vsel %vm984_vm4, %v982_v23, %v979_v19 }
 0x105   : > { %1436 = vmatmul.mubr.bf16.vlgmr.msra.gmra.mrb[0].mxu1 %v2533_v17  ;;  %v986_v53 = vadd.f32 %v985_v31, %v972_v27  ;;  %v987_v17 = vld [vmem:[%s2028_s7] sm:$0xff] }
 0x107   : > { %913 = vmatmul.mubr.bf16.vlgmr.msra.gmra.mrb[4].mxu0 %v2559_v35  ;;  %v995_v35 = vld [vmem:[%s2039_s13] sm:$0xff] }
 0x1ba   : > { %v1353_v2 = vpop.f32.mrb[0].mxu0 }
 0x1bb   : > { %v1354_v11 = vpop.f32.mrb[1].mxu0 }
 0x1bc   : > { %v1355_v16 = vadd.f32 %v1354_v11, %v1353_v2  ;;  %v1356_v18 = vpop.f32.mrb[2].mxu0 }
 0x1bd   : > { %v1357_v20 = vpop.f32.mrb[3].mxu0 }
 0x1d8   : > { %v954_v30 = vpop.f32.mrb[0].mxu1 }
 0x1d9   : > { %v1437_v34 = vpop.f32.mrb[1].mxu1 }
 0x1da   : > { %v957_v15 = vpop.f32.mrb[2].mxu1  ;;  %v1384_v36 = vpop.f32.mrb[4].mxu0 }
 0x1db   : > { %v1438_v40 = vpop.f32.mrb[3].mxu1  ;;  %v1385_v42 = vpop.f32.mrb[5].mxu0 }
 0x1dc   : > { %v1386_v45 = vadd.f32 %v1385_v42, %v1384_v36  ;;  %v1387_v47 = vpop.f32.mrb[6].mxu0 }
 0x1dd   : > { %v1388_v49 = vpop.f32.mrb[7].mxu0 }
 0x1de   : > { %v1439_v52 = vadd.f32 %v1386_v45, %v1355_v16 }
 0x1e0   : > { %v1440_v54 = vadd.f32 %v1439_v52, %v954_v30 }
 0x1e2   : > { %v960_v57 = vmax.f32 %v1440_v54, 0.0 }
 0x1e4   : > { %1559 = vrsqrt.f32 %v960_v57  ;;  %vm963_vm13 = vcmp.eq.f32.partialorder %v960_v57, inf  ;;  %v966_v60 = vand.u32 2147483648, %v960_v57  ;;  %vm965_vm0 = vcmp.eq.f32.partialorder %v960_v57, 0.0 }
 0x1ee   : > { %v1560_v41 = vpop.eup %1559 }
 0x1ef   : > { %v962_v50 = vmul.f32 %v1560_v41, %v960_v57 }
 0x1f1   : > { %v964_v6 = vsel %vm963_vm13, %v960_v57, %v962_v50 }
 0x1f2   : > { %v967_v8 = vsel %vm965_vm0, %v966_v60, %v964_v6 }
 0x1f3   : > { %v988_v21 = vadd.f32 %v986_v53, %v967_v8 }
 0x1f5   : > { %v989_v29 = vmul.f32 %v988_v21, %v987_v17 }
 0x1f7   : > { %v994_v37 = vsel %vm993_vm12, %v989_v29, 0.0 }
 0x1f8   : > { %v997_v39 = vadd.f32 %v995_v35, %v994_v37 }
 0x1fa   : > { %998 = vst [vmem:[%s2039_s13] sm:$0xff] %v997_v39 }
 0x1fb PF: > { %s1334_s16 = sshll.u32 %s1784_s23, 7  ;;  %s1013_s12 = sshll.u32 %s2039_s13, 4  ;;  %s1014_s12 = int_to_ptr.vmem [resolvable:$true] %s1013_s12 }
 0x1fc   : > { %s2825_s17 = scalar_lea.hbm %s2880_s5, %s1334_s16  ;;  %s1000_s27 = scalar_lea.sflag [#allocation4], %s423_s26 }
 0x1fd   : > { %s1681_s21 = scalar_lea.vmem %s1014_s12, 128  ;;  %p3129_p11 = scmp.ne.s32.totalorder %s2956_s9, 0 }
 0x1fe   : > { %p1682_p10 = scmp.ne.s32.totalorder %s1014_s12, %s1681_s21  ;;  %s1802_s6 = smov [#allocation10]  }
 0x1ff   : > { %s1685_s7 = sshll.u32 %s1802_s6, 4  ;;  %s1686_s7 = int_to_ptr.vmem [resolvable:$false] %s1685_s7 }
 0x200   : > { %p1683_p1 = pnand %p1682_p10, %p3129_p11  ;;  %s1687_s24 = scalar_lea.vmem %s1686_s7, 256 }
 0x201   : > { %p1688_p13 = scmp.lt.s32.totalorder %s1014_s12, %s1686_s7  ;;  %p1689_p9 = scmp.lt.s32.totalorder %s1687_s24, %s1681_s21 }
 0x202   : > { %p1684_p4 = pneg %p1683_p1 }
 0x203   : > { %p1690_p6 = por %p1689_p9, %p1688_p13 }
 0x205   : > { %p1691_p3 = pnand %p1690_p6, %p1684_p4 }
 0x207   : > { %1694 = shalt.err (!%p1691_p3)
}
 0x208   : > { %s1695_s23 = scalar_lea.hbm %s2825_s17, 128  ;;  %s1699_s13 = scalar_lea.hbm %s2880_s5, 256 }
 0x209   : > { %p1696_p12 = scmp.ne.s32.totalorder %s2825_s17, %s1695_s23  ;;  %p1700_p7 = scmp.lt.u32.totalorder %s2825_s17, %s2880_s5 }
 0x20a   : > { %p1701_p8 = scmp.lt.u32.totalorder %s1699_s13, %s1695_s23  ;;  %p1703_p10 = scmp.lt.u32.totalorder %s1695_s23, %s2825_s17 }
 0x20b   : > { %p1697_p0 = pnand %p1696_p12, %p3129_p11 }
 0x20c   : > { %p1702_p5 = por %p1701_p8, %p1700_p7 }
 0x20d   : > { %p1698_p2 = pneg %p1697_p0 }
 0x20e   : > { %p1704_p1 = por %p1703_p10, %p1702_p5 }
 0x210   : > { %p1705_p4 = pnand %p1704_p1, %p1698_p2 }
 0x212   : > { %1708 = shalt.err (!%p1705_p4)
}
 0x213   : > { %1458 = dma.vmem_to_hbm [thread:$0]  (%p3129_p11), %s1014_s12, 128, %s2825_s17, %s1000_s27  }
 0x214 PF: > { %s1025_s29 = sand.u32 1, %s1764_s18   ;;  %p3130_p13 = scmp.ne.s32.totalorder %s2957_s10, 0 }
 0x215   : > { %p3131_p9 = scmp.ge.s32.totalorder %s1792_s25, 2  ;;  %s1026_s30 = scalar_lea.sflag [#allocation4], %s1025_s29 }
 0x217   : > { %p1474_p6 = pnand %p3131_p9, %p3130_p13 }
 0x219   : > { %1758 = dma.done.wait (!%p1474_p6), %s1026_s30, 128  }
 0x21a   : > { %1760 = vsyncadd (!%p1474_p6), %s1026_s30, 4294967168  ;;  %s27_s25 = sadd.s32 1, %s1792_s25   ;;  %s3132_s28 = sld [smem:[#allocation17_spill]] }
 0x21b   : > { %p24_p3 = scmp.ge.s32.totalorder %s27_s25, 4   ;;  %s3133_s23 = sld [smem:[#allocation15_spill]] }
 0x21c   : > { %s3134_s24 = sld [smem:[#allocation16_spill]]  ;;  %s3135_s18 = smov %s1768_s19 }
 0x21d   : > { %s3136_s19 = smov %s1772_s20  ;;  %s3138_s21 = smov %s1780_s22 }
 0x21e   : > { %s2865_s22 = smov 0   ;;  %26 = sbr.rel (!%p24_p3) target bundleno = 13 (0xd), region = 133 }
 0x220   : > { %s3137_s20 = smov %s3132_s28 }
 0x225   :  { %1031 = vsyncpa [#allocation3], 1 }
 0x226   :  { %1033 = vsyncpa [#allocation3 + $0x1], 1 }
 0x227   :  { %1034 = vsyncpa [#allocation6], 1 }
 0x228   :  { %1036 = vsyncpa [#allocation6 + $0x1], 1 }
 0x229   :  { %1037 = vsyncpa [#allocation9], 1 }
 0x22a   :  { %1039 = vsyncpa [#allocation9 + $0x1], 1 }
 0x22b   :  { %1040 = vsyncpa [#allocation4], 1 }
 0x22c   :  { %1042 = vsyncpa [#allocation4 + $0x1], 1 }

</bundles_post_ra>
